<compile_context>
chip_gen: v7x
topology: tpu7x:2x2x1
jax: 0.10.0
libtpu: 0.0.40
codegen_flags: <defaults>
</compile_context>

<pallas_src>
import jax
import jax.numpy as jnp
from jax.experimental import pallas as pl
from jax.experimental.pallas import tpu as pltpu

_HIDDEN = 5                      # Linear(1, 5) hidden width
_LANES = 512                     # lane width of the batch slab (multiple of 128)
_TARGET_BLOCK_BYTES = 2 << 20    # ~2 MiB per grid step


def _round_up(v, m):
    return (v + m - 1) // m * m


def _mlp_kernel(x_ref, w1_ref, b1_ref, w2_ref, b2_ref, o_ref):
    # x_ref / o_ref : [block_rows, LANES] contiguous batch tile in VMEM.
    # Params (constant-folded in the wrapper) live in SMEM:
    #   w1_ref = 0.5*w1   b1_ref = 0.5*b1   w2_ref = 0.25*w2
    #   b2_ref = 0.5*b2 + 0.25*sum(w2)
    # With sigmoid(z) = 0.5*tanh(z/2) + 0.5 the whole forward collapses to
    #   out = 0.5*tanh(acc) + 0.5,  acc = b2' + sum_j w2'_j*tanh(x*w1'_j + b1'_j)
    # i.e. 6 EUP tanh pushes per element instead of 6x(exp + recip).
    x = x_ref[...].astype(jnp.float32)
    acc = jnp.full(x.shape, b2_ref[0], dtype=jnp.float32)
    for j in range(_HIDDEN):                         # fully unrolled VPU/EUP work
        acc = acc + w2_ref[j] * jnp.tanh(x * w1_ref[j] + b1_ref[j])
    o_ref[...] = (0.5 * jnp.tanh(acc) + 0.5).astype(o_ref.dtype)


def torch_with_activation_forward(x, w1, b1, w2, b2, *, lanes=_LANES,
                                  target_block_bytes=_TARGET_BLOCK_BYTES,
                                  min_pallas_batch=0):
    """x: [B, 1]; w1: [1, 5]; b1: [5]; w2: [5, 1]; b2: [1] -> [B, 1]."""
    B = x.shape[0]
    if B < min_pallas_batch:
        # Tiny batches: launch overhead dominates; plain XLA.
        h = jax.nn.sigmoid(x @ w1 + b1)
        return jax.nn.sigmoid(h @ w2 + b2).astype(x.dtype)

    assert lanes % 128 == 0, "lanes must be a multiple of 128"
    itemsize = jnp.dtype(x.dtype).itemsize
    sub = {4: 8, 2: 16, 1: 32}.get(itemsize, 8)      # native sublane packing

    # Row-major (rows, lanes) slab: each grid block is one contiguous HBM burst.
    rows = pl.cdiv(B, lanes)
    rows_pad = _round_up(rows, sub)

    # ~target_block_bytes per step, but aim for >= 2 grid steps so
    # ("parallel",) actually shards across both v7x TensorCores.
    max_block_rows = max(sub, (target_block_bytes // (lanes * itemsize)) // sub * sub)
    block_rows = min(max_block_rows, max(sub, _round_up(pl.cdiv(rows_pad, 2), sub)))
    n_grid = pl.cdiv(rows_pad, block_rows)           # ragged last block is fine

    n_total = rows_pad * lanes
    x_flat = x.reshape(-1)
    if n_total != B:
        # TODO(synk): accept/return the padded (rows, lanes) layout from the
        # caller to drop this extra HBM pass entirely.
        x_flat = jnp.pad(x_flat, (0, n_total - B))
    x2d = x_flat.reshape(rows_pad, lanes)

    # Wrapper-side constant folding (free): sigmoid(z) = 0.5*tanh(z/2) + 0.5.
    w1f = w1.reshape(_HIDDEN).astype(jnp.float32)
    b1f = b1.reshape(_HIDDEN).astype(jnp.float32)
    w2f = w2.reshape(_HIDDEN).astype(jnp.float32)
    b2f = b2.reshape(()).astype(jnp.float32)
    w1p = 0.5 * w1f
    b1p = 0.5 * b1f
    w2p = 0.25 * w2f
    b2p = (0.5 * b2f + 0.25 * jnp.sum(w2f)).reshape(1)

    smem = pl.BlockSpec(memory_space=pltpu.MemorySpace.SMEM)
    cost = pl.CostEstimate(
        flops=22 * n_total,                 # 5x(mul+add+fma) + epilogue fma
        transcendentals=6 * n_total,        # 6 tanh per element
        bytes_accessed=2 * n_total * itemsize)

    out2d = pl.pallas_call(
        _mlp_kernel,
        out_shape=jax.ShapeDtypeStruct((rows_pad, lanes), x.dtype),
        grid=(n_grid,),
        in_specs=[
            pl.BlockSpec((block_rows, lanes), lambda i: (i, 0)),  # streamed tile
            smem, smem, smem, smem,                               # pinned params
        ],
        out_specs=pl.BlockSpec((block_rows, lanes), lambda i: (i, 0)),
        compiler_params=pltpu.CompilerParams(
            dimension_semantics=("parallel",)),
        cost_estimate=cost,
    )(x2d, w1p, b1p, w2p, b2p)

    out_flat = out2d.reshape(-1)
    if n_total != B:
        out_flat = out_flat[:B]
    return out_flat.reshape(B, 1)


def init_params(key):
    """Deterministic init matching torch.nn.Linear shapes (weights stored as [in, out])."""
    k1, k2, k3, k4 = jax.random.split(key, 4)
    bound1 = 1.0 / jnp.sqrt(1.0)   # l1: in_features = 1
    bound2 = 1.0 / jnp.sqrt(5.0)   # l2: in_features = 5
    w1 = jax.random.uniform(k1, (1, 5), jnp.float32, -bound1, bound1)  # l1.weight.T
    b1 = jax.random.uniform(k2, (5,), jnp.float32, -bound1, bound1)    # l1.bias
    w2 = jax.random.uniform(k3, (5, 1), jnp.float32, -bound2, bound2)  # l2.weight.T
    b2 = jax.random.uniform(k4, (1,), jnp.float32, -bound2, bound2)    # l2.bias
    return w1, b1, w2, b2


def reference_forward(x, w1, b1, w2, b2):
    h = jax.nn.sigmoid(x @ w1 + b1)
    return jax.nn.sigmoid(h @ w2 + b2)


if __name__ == "__main__":
    key = jax.random.PRNGKey(0)
    k_x, k_p = jax.random.split(key)
    w1, b1, w2, b2 = init_params(k_p)

    # B=8: single padded tile.  B=4099: padding + 2 grid steps.
    # B=9000: multi-step grid with a ragged (masked-write) last block.
    for B in (8, 4099, 9000):
        x = jax.random.normal(jax.random.fold_in(k_x, B), (B, 1), jnp.float32)
        out = jax.block_until_ready(
            torch_with_activation_forward(x, w1, b1, w2, b2))
        ref = reference_forward(x, w1, b1, w2, b2)
        assert out.shape == (B, 1), out.shape
        assert jnp.allclose(out, ref, atol=1e-5, rtol=1e-5), (B, out, ref)

    print("KERNEL_OK")
</pallas_src>

<mosaic_0001>
module attributes {stable_mosaic.version = 11 : i64} {
  func.func @_mlp_kernel(%arg0: i32, %arg1: memref<8x512xf32, #tpu.memory_space<vmem>>, %arg2: memref<5xf32, #tpu.memory_space<smem>>, %arg3: memref<5xf32, #tpu.memory_space<smem>>, %arg4: memref<5xf32, #tpu.memory_space<smem>>, %arg5: memref<1xf32, #tpu.memory_space<smem>>, %arg6: memref<8x512xf32, #tpu.memory_space<vmem>>) attributes {dimension_semantics = [#tpu.dimension_semantics<parallel>], iteration_bounds = array<i64: 1>, scalar_prefetch = 0 : i64, scratch_operands = 0 : i64, tpu.core_type = #tpu.core_type<tc>, window_params = [{transform_indices = @transform_0, window_bounds = array<i64: 8, 512>}, {transform_indices = @transform_1, window_bounds = array<i64: 5>}, {transform_indices = @transform_2, window_bounds = array<i64: 5>}, {transform_indices = @transform_3, window_bounds = array<i64: 5>}, {transform_indices = @transform_4, window_bounds = array<i64: 1>}, {transform_indices = @transform_5, window_bounds = array<i64: 8, 512>}]} {
    %c0 = arith.constant 0 : index
    %c0_0 = arith.constant 0 : index
    %0 = vector.load %arg1[%c0, %c0_0] : memref<8x512xf32, #tpu.memory_space<vmem>>, vector<8x512xf32>
    %c0_1 = arith.constant 0 : index
    %1 = memref.load %arg5[%c0_1] : memref<1xf32, #tpu.memory_space<smem>>
    %2 = vector.broadcast %1 : f32 to vector<8x512xf32>
    %c0_2 = arith.constant 0 : index
    %3 = memref.load %arg4[%c0_2] : memref<5xf32, #tpu.memory_space<smem>>
    %c0_3 = arith.constant 0 : index
    %4 = memref.load %arg2[%c0_3] : memref<5xf32, #tpu.memory_space<smem>>
    %5 = vector.broadcast %4 : f32 to vector<8x512xf32>
    %6 = arith.mulf %0, %5 : vector<8x512xf32>
    %c0_4 = arith.constant 0 : index
    %7 = memref.load %arg3[%c0_4] : memref<5xf32, #tpu.memory_space<smem>>
    %8 = vector.broadcast %7 : f32 to vector<8x512xf32>
    %9 = arith.addf %6, %8 : vector<8x512xf32>
    %10 = math.tanh %9 : vector<8x512xf32>
    %11 = vector.broadcast %3 : f32 to vector<8x512xf32>
    %12 = arith.mulf %11, %10 : vector<8x512xf32>
    %13 = arith.addf %2, %12 : vector<8x512xf32>
    %c1 = arith.constant 1 : index
    %14 = memref.load %arg4[%c1] : memref<5xf32, #tpu.memory_space<smem>>
    %c1_5 = arith.constant 1 : index
    %15 = memref.load %arg2[%c1_5] : memref<5xf32, #tpu.memory_space<smem>>
    %16 = vector.broadcast %15 : f32 to vector<8x512xf32>
    %17 = arith.mulf %0, %16 : vector<8x512xf32>
    %c1_6 = arith.constant 1 : index
    %18 = memref.load %arg3[%c1_6] : memref<5xf32, #tpu.memory_space<smem>>
    %19 = vector.broadcast %18 : f32 to vector<8x512xf32>
    %20 = arith.addf %17, %19 : vector<8x512xf32>
    %21 = math.tanh %20 : vector<8x512xf32>
    %22 = vector.broadcast %14 : f32 to vector<8x512xf32>
    %23 = arith.mulf %22, %21 : vector<8x512xf32>
    %24 = arith.addf %13, %23 : vector<8x512xf32>
    %c2 = arith.constant 2 : index
    %25 = memref.load %arg4[%c2] : memref<5xf32, #tpu.memory_space<smem>>
    %c2_7 = arith.constant 2 : index
    %26 = memref.load %arg2[%c2_7] : memref<5xf32, #tpu.memory_space<smem>>
    %27 = vector.broadcast %26 : f32 to vector<8x512xf32>
    %28 = arith.mulf %0, %27 : vector<8x512xf32>
    %c2_8 = arith.constant 2 : index
    %29 = memref.load %arg3[%c2_8] : memref<5xf32, #tpu.memory_space<smem>>
    %30 = vector.broadcast %29 : f32 to vector<8x512xf32>
    %31 = arith.addf %28, %30 : vector<8x512xf32>
    %32 = math.tanh %31 : vector<8x512xf32>
    %33 = vector.broadcast %25 : f32 to vector<8x512xf32>
    %34 = arith.mulf %33, %32 : vector<8x512xf32>
    %35 = arith.addf %24, %34 : vector<8x512xf32>
    %c3 = arith.constant 3 : index
    %36 = memref.load %arg4[%c3] : memref<5xf32, #tpu.memory_space<smem>>
    %c3_9 = arith.constant 3 : index
    %37 = memref.load %arg2[%c3_9] : memref<5xf32, #tpu.memory_space<smem>>
    %38 = vector.broadcast %37 : f32 to vector<8x512xf32>
    %39 = arith.mulf %0, %38 : vector<8x512xf32>
    %c3_10 = arith.constant 3 : index
    %40 = memref.load %arg3[%c3_10] : memref<5xf32, #tpu.memory_space<smem>>
    %41 = vector.broadcast %40 : f32 to vector<8x512xf32>
    %42 = arith.addf %39, %41 : vector<8x512xf32>
    %43 = math.tanh %42 : vector<8x512xf32>
    %44 = vector.broadcast %36 : f32 to vector<8x512xf32>
    %45 = arith.mulf %44, %43 : vector<8x512xf32>
    %46 = arith.addf %35, %45 : vector<8x512xf32>
    %c4 = arith.constant 4 : index
    %47 = memref.load %arg4[%c4] : memref<5xf32, #tpu.memory_space<smem>>
    %c4_11 = arith.constant 4 : index
    %48 = memref.load %arg2[%c4_11] : memref<5xf32, #tpu.memory_space<smem>>
    %49 = vector.broadcast %48 : f32 to vector<8x512xf32>
    %50 = arith.mulf %0, %49 : vector<8x512xf32>
    %c4_12 = arith.constant 4 : index
    %51 = memref.load %arg3[%c4_12] : memref<5xf32, #tpu.memory_space<smem>>
    %52 = vector.broadcast %51 : f32 to vector<8x512xf32>
    %53 = arith.addf %50, %52 : vector<8x512xf32>
    %54 = math.tanh %53 : vector<8x512xf32>
    %55 = vector.broadcast %47 : f32 to vector<8x512xf32>
    %56 = arith.mulf %55, %54 : vector<8x512xf32>
    %57 = arith.addf %46, %56 : vector<8x512xf32>
    %58 = math.tanh %57 : vector<8x512xf32>
    %cst = arith.constant 5.000000e-01 : f32
    %59 = vector.broadcast %cst : f32 to vector<8x512xf32>
    %60 = arith.mulf %59, %58 : vector<8x512xf32>
    %cst_13 = arith.constant 5.000000e-01 : f32
    %61 = vector.broadcast %cst_13 : f32 to vector<8x512xf32>
    %62 = arith.addf %60, %61 : vector<8x512xf32>
    %c0_14 = arith.constant 0 : index
    %c0_15 = arith.constant 0 : index
    %63 = vector.load %arg6[%c0_14, %c0_15] : memref<8x512xf32, #tpu.memory_space<vmem>>, vector<8x512xf32>
    tpu.vector_store %arg6[%c0_14, %c0_15], %62 {strides = array<i32>} : memref<8x512xf32, #tpu.memory_space<vmem>>, vector<8x512xf32>,
    return
  }
  func.func @transform_0(%arg0: i32) -> (i32, i32) {
    %c0_i32 = arith.constant 0 : i32
    %c0_i32_0 = arith.constant 0 : i32
    return %arg0, %c0_i32 : i32, i32
  }
  func.func @transform_1(%arg0: i32) -> i32 {
    %c0_i32 = arith.constant 0 : i32
    %c0_i32_0 = arith.constant 0 : i32
    return %c0_i32 : i32
  }
  func.func @transform_2(%arg0: i32) -> i32 {
    %c0_i32 = arith.constant 0 : i32
    %c0_i32_0 = arith.constant 0 : i32
    return %c0_i32 : i32
  }
  func.func @transform_3(%arg0: i32) -> i32 {
    %c0_i32 = arith.constant 0 : i32
    %c0_i32_0 = arith.constant 0 : i32
    return %c0_i32 : i32
  }
  func.func @transform_4(%arg0: i32) -> i32 {
    %c0_i32 = arith.constant 0 : i32
    %c0_i32_0 = arith.constant 0 : i32
    return %c0_i32 : i32
  }
  func.func @transform_5(%arg0: i32) -> (i32, i32) {
    %c0_i32 = arith.constant 0 : i32
    %c0_i32_0 = arith.constant 0 : i32
    return %arg0, %c0_i32 : i32, i32
  }
}

</mosaic_0001>

<bundles_post_ra>
// kernel: tpu_custom_call.1
= control target key start
LH: loop header
LB: loop body
LE: loop exit
PB: predicated region body
PF: predicated region fallthrough
CT: control target
= control target key end

     0   :  { %11 = vsyncpa [#allocation4], 0  ;;  %s544_s0 = inlined_call_operand.hbm [shape: f32[8,512], index: 0, kind: input, shape index: {}]   ;;  %s545_s1 = inlined_call_operand.vmem [shape: f32[5], index: 1, kind: input, shape index: {}]   ;;  %s546_s2 = inlined_call_operand.vmem [shape: f32[5], index: 2, kind: input, shape index: {}]   ;;  %s547_s3 = inlined_call_operand.vmem [shape: f32[5], index: 3, kind: input, shape index: {}]   ;;  %s548_s4 = inlined_call_operand.<no memory space> [shape: f32[1], index: 4, kind: input, shape index: {}]   ;;  %s549_s5 = inlined_call_operand.hbm [shape: f32[8,512], index: 5, kind: output, shape index: {}]  }
   0x1   :  { %12 = vsyncpa [#allocation6], 0 }
   0x2   :  { %13 = vsyncpa [#allocation9], 0  ;;  %s41_s20 = sshll.u32 %s546_s2, 4  ;;  %s42_s20 = int_to_ptr.vmem [resolvable:$true] %s41_s20 }
   0x3   :  { %14 = vsyncpa [#allocation5], 0  ;;  %s304_s21 = scalar_lea.vmem %s42_s20, 16  ;;  %p309_p1 = scmp.lt.s32.totalorder %s42_s20, %s42_s20 }
   0x4   :  { %p305_p0 = scmp.ne.s32.totalorder %s42_s20, %s304_s21  ;;  %p310_p2 = scmp.lt.s32.totalorder %s304_s21, %s304_s21 }
   0x6   :  { %p311_p3 = por %p310_p2, %p309_p1 }
   0x8   :  { %p312_p4 = pnand %p311_p3, %p305_p0 }
   0xa   :  { %315 = shalt.err (!%p312_p4)
}
   0xb   :  { %s392_s22 = smov [#allocation8]   ;;  %s393_s23 = smov [#allocation3]  }
   0xc   :  { %44 = dma.vmem_to_smem %s42_s20, 16, %s392_s22, [#allocation9]  }
   0xd   :  { %s21_s24 = sshll.u32 %s393_s23, 4  ;;  %s31_s27 = sshll.u32 %s545_s1, 4  ;;  %s22_s24 = int_to_ptr.vmem [resolvable:$true] %s21_s24  ;;  %s32_s27 = int_to_ptr.vmem [resolvable:$true] %s31_s27 }
   0xe   :  { %s316_s29 = scalar_lea.hbm %s544_s0, 512 }
   0xf   :  { %p317_p5 = scmp.ne.s32.totalorder %s544_s0, %s316_s29  ;;  %p320_p6 = scmp.lt.u32.totalorder %s316_s29, %s544_s0 }
  0x11   :  { %p322_p7 = pnand %p320_p6, %p317_p5 }
  0x13   :  { %325 = shalt.err (!%p322_p7)
}
  0x14   :  { %s326_s9 = scalar_lea.vmem %s22_s24, 512  ;;  %p331_p9 = scmp.lt.s32.totalorder %s22_s24, %s22_s24 }
  0x15   :  { %p327_p8 = scmp.ne.s32.totalorder %s22_s24, %s326_s9  ;;  %p332_p10 = scmp.lt.s32.totalorder %s326_s9, %s326_s9 }
  0x17   :  { %p333_p11 = por %p332_p10, %p331_p9 }
  0x19   :  { %p334_p12 = pnand %p333_p11, %p327_p8 }
  0x1b   :  { %337 = shalt.err (!%p334_p12)
}
  0x1c   :  { %24 = dma.hbm_to_vmem [thread:$0]  %s544_s0, 512, %s22_s24, [#allocation4]  }
  0x1d   :  { %s51_s13 = sshll.u32 %s547_s3, 4  ;;  %s338_s14 = scalar_lea.vmem %s32_s27, 16  ;;  %s52_s13 = int_to_ptr.vmem [resolvable:$true] %s51_s13 }
  0x1e   :  { %p339_p13 = scmp.ne.s32.totalorder %s32_s27, %s338_s14  ;;  %p343_p0 = scmp.lt.s32.totalorder %s32_s27, %s32_s27 }
  0x1f   :  { %p344_p1 = scmp.lt.s32.totalorder %s338_s14, %s338_s14 }
  0x21   :  { %p345_p2 = por %p344_p1, %p343_p0 }
  0x23   :  { %p346_p3 = pnand %p345_p2, %p339_p13 }
  0x25   :  { %349 = shalt.err (!%p346_p3)
}
  0x26   :  { %s394_s15 = smov [#allocation7]   ;;  %s350_s16 = scalar_lea.vmem %s52_s13, 16 }
  0x27   :  { %34 = dma.vmem_to_smem %s32_s27, 16, %s394_s15, [#allocation6]  }
  0x28   :  { %p351_p4 = scmp.ne.s32.totalorder %s52_s13, %s350_s16  ;;  %p355_p5 = scmp.lt.s32.totalorder %s52_s13, %s52_s13 }
  0x29   :  { %p356_p6 = scmp.lt.s32.totalorder %s350_s16, %s350_s16 }
  0x2b   :  { %p357_p7 = por %p356_p6, %p355_p5 }
  0x2d   :  { %p358_p8 = pnand %p357_p7, %p351_p4 }
  0x2f   :  { %361 = shalt.err (!%p358_p8)
}
  0x30   :  { %s395_s0 = smov [#allocation10]  }
  0x31   :  { %54 = dma.vmem_to_smem %s52_s13, 16, %s395_s0, [#allocation9]  }
  0x32   :  { %384 = dma.done.wait [#allocation4], 512  }
  0x33   :  { %385 = vsyncadd [#allocation4], 4294966784 }
  0x34   :  { %386 = dma.done.wait [#allocation6], 16  }
  0x35   :  { %387 = vsyncadd [#allocation6], 4294967280 }
  0x36   :  { %388 = dma.done.wait [#allocation9], 32  }
  0x37   :  { %389 = vsyncadd [#allocation9], 4294967264 }
  0x38   :  { %69 = sfence }
  0x39   :  { %s77_s3 = sld [smem:[#allocation7]]  ;;  %s240_s18 = sld [smem:[#allocation7 + $0x1]]  ;;  %v70_v0 = vld [vmem:[#allocation3] sm:$0xff]  ;;  %v71_v1 = vld [vmem:[#allocation3 + $0x8] sm:$0xff]  ;;  %v72_v11 = vld [vmem:[#allocation3 + $0x10] sm:$0xff]  ;;  %v476_v31 = vstv %s548_s4 }
  0x3a   :  { %s83_s17 = sld [smem:[#allocation8]]  ;;  %s241_s19 = sld [smem:[#allocation8 + $0x1]]  ;;  %v73_v34 = vld [vmem:[#allocation3 + $0x18] sm:$0xff] }
  0x3b   :  { %s243_s20 = sld [smem:[#allocation7 + $0x2]]  ;;  %s246_s22 = sld [smem:[#allocation7 + $0x3]] }
  0x3c   :  { %s244_s21 = sld [smem:[#allocation8 + $0x2]]  ;;  %s247_s23 = sld [smem:[#allocation8 + $0x3]] }
  0x3d   :  { %s249_s24 = sld [smem:[#allocation7 + $0x4]]  ;;  %s456_s26 = sld [smem:[#allocation10]] }
  0x3e   :  { %s250_s25 = sld [smem:[#allocation8 + $0x4]]  ;;  %s461_s27 = sld [smem:[#allocation10 + $0x1]] }
  0x3f   :  { %v78_v2 = vstv %s77_s3  ;;  %v104_v6 = vstv %s240_s18  ;;  %s464_s2 = sld [smem:[#allocation10 + $0x2]]  ;;  %s469_s28 = sld [smem:[#allocation10 + $0x3]] }
  0x40   :  { %v79_v3 = vmul.f32 %v78_v2, %v70_v0  ;;  %v448_v4 = vstv %s83_s17  ;;  %v80_v5 = vmul.f32 %v78_v2, %v71_v1  ;;  %v450_v7 = vstv %s241_s19  ;;  %s480_s6 = sld [smem:[#allocation10 + $0x4]]  ;;  %s396_s4 = smov [#allocation11]  }
  0x41   :  { %v105_v9 = vmul.f32 %v104_v6, %v70_v0  ;;  %v130_v10 = vstv %s243_s20  ;;  %v156_v16 = vstv %s246_s22  ;;  %v81_v21 = vmul.f32 %v78_v2, %v72_v11  ;;  %s228_s7 = sshll.u32 %s396_s4, 4  ;;  %s229_s7 = int_to_ptr.vmem [resolvable:$true] %s228_s7 }
  0x42   :  { %v85_v8 = vadd.f32 %v448_v4, %v79_v3  ;;  %v131_v12 = vmul.f32 %v130_v10, %v70_v0  ;;  %v453_v13 = vstv %s244_s21  ;;  %v86_v14 = vadd.f32 %v448_v4, %v80_v5  ;;  %s362_s8 = scalar_lea.vmem %s229_s7, 512  ;;  %p367_p10 = scmp.lt.s32.totalorder %s229_s7, %s229_s7 }
  0x43   :  { %v111_v15 = vadd.f32 %v450_v7, %v105_v9  ;;  %v459_v17 = vstv %s247_s23  ;;  %v157_v19 = vmul.f32 %v156_v16, %v70_v0  ;;  %v182_v20 = vstv %s249_s24  ;;  %p363_p9 = scmp.ne.s32.totalorder %s229_s7, %s362_s8  ;;  %p368_p11 = scmp.lt.s32.totalorder %s362_s8, %s362_s8 }
  0x44   :  { %256 = vtanh.f32 %v85_v8  ;;  %v137_v18 = vadd.f32 %v453_v13, %v131_v12  ;;  %v183_v22 = vmul.f32 %v182_v20, %v70_v0  ;;  %v466_v23 = vstv %s250_s25 }
  0x45   :  { %258 = vtanh.f32 %v111_v15  ;;  %v106_v24 = vmul.f32 %v104_v6, %v71_v1  ;;  %v163_v25 = vadd.f32 %v459_v17, %v157_v19  ;;  %v132_v26 = vmul.f32 %v130_v10, %v71_v1  ;;  %p369_p12 = por %p368_p11, %p367_p10 }
  0x46   :  { %260 = vtanh.f32 %v137_v18  ;;  %v158_v27 = vmul.f32 %v156_v16, %v71_v1  ;;  %v189_v28 = vadd.f32 %v466_v23, %v183_v22  ;;  %v184_v30 = vmul.f32 %v182_v20, %v71_v1 }
  0x47   :  { %262 = vtanh.f32 %v86_v14  ;;  %v112_v29 = vadd.f32 %v450_v7, %v106_v24  ;;  %v138_v32 = vadd.f32 %v453_v13, %v132_v26  ;;  %v107_v36 = vmul.f32 %v104_v6, %v72_v11  ;;  %p370_p13 = pnand %p369_p12, %p363_p9 }
  0x48   :  { %264 = vtanh.f32 %v163_v25  ;;  %v164_v33 = vadd.f32 %v459_v17, %v158_v27  ;;  %v190_v35 = vadd.f32 %v466_v23, %v184_v30  ;;  %v133_v37 = vmul.f32 %v130_v10, %v72_v11 }
  0x49   :  { %266 = vtanh.f32 %v189_v28  ;;  %v87_v38 = vadd.f32 %v448_v4, %v81_v21  ;;  %v159_v39 = vmul.f32 %v156_v16, %v72_v11  ;;  %v185_v40 = vmul.f32 %v182_v20, %v72_v11 }
  0x4a   :  { %268 = vtanh.f32 %v112_v29  ;;  %v485_v41 = vstv %s456_s26  ;;  %v113_v42 = vadd.f32 %v450_v7, %v107_v36  ;;  %v82_v43 = vmul.f32 %v78_v2, %v73_v34 }
  0x4b   :  { %270 = vtanh.f32 %v138_v32  ;;  %v489_v44 = vstv %s461_s27  ;;  %v139_v45 = vadd.f32 %v453_v13, %v133_v37  ;;  %v108_v46 = vmul.f32 %v104_v6, %v73_v34 }
  0x4c   :  { %272 = vtanh.f32 %v164_v33  ;;  %v493_v48 = vstv %s464_s2  ;;  %v165_v49 = vadd.f32 %v459_v17, %v159_v39  ;;  %v134_v50 = vmul.f32 %v130_v10, %v73_v34 }
  0x4d   :  { %274 = vtanh.f32 %v190_v35  ;;  %v191_v52 = vadd.f32 %v466_v23, %v185_v40  ;;  %v160_v53 = vmul.f32 %v156_v16, %v73_v34  ;;  %v499_v55 = vstv %s469_s28 }
  0x4e   :  { %v257_v47 = vpop.eup %256  ;;  %276 = vtanh.f32 %v87_v38  ;;  %v88_v56 = vadd.f32 %v448_v4, %v82_v43  ;;  %v186_v57 = vmul.f32 %v182_v20, %v73_v34  ;;  %v114_v61 = vadd.f32 %v450_v7, %v108_v46 }
  0x4f   :  { %v94_v51 = vmul.f32 %v257_v47, %v485_v41  ;;  %v259_v54 = vpop.eup %258  ;;  %278 = vtanh.f32 %v113_v42  ;;  %v507_v0 = vstv %s480_s6  ;;  %v140_v1 = vadd.f32 %v453_v13, %v134_v50 }
  0x50   :  { %v261_v58 = vpop.eup %260  ;;  %v120_v60 = vmul.f32 %v259_v54, %v489_v44  ;;  %280 = vtanh.f32 %v139_v45  ;;  %v166_v5 = vadd.f32 %v459_v17, %v160_v53  ;;  %v192_v7 = vadd.f32 %v466_v23, %v186_v57 }
  0x51   :  { %v98_v59 = vadd.f32 %v94_v51, %v476_v31  ;;  %v263_v62 = vpop.eup %262  ;;  %v146_v63 = vmul.f32 %v261_v58, %v493_v48  ;;  %282 = vtanh.f32 %v165_v49 }
  0x52   :  { %v265_v2 = vpop.eup %264  ;;  %v95_v4 = vmul.f32 %v263_v62, %v485_v41  ;;  %284 = vtanh.f32 %v191_v52 }
  0x53   :  { %v124_v3 = vadd.f32 %v120_v60, %v98_v59  ;;  %v267_v6 = vpop.eup %266  ;;  %v172_v8 = vmul.f32 %v265_v2, %v499_v55  ;;  %286 = vtanh.f32 %v88_v56 }
  0x54   :  { %v269_v9 = vpop.eup %268  ;;  %v198_v11 = vmul.f32 %v267_v6, %v507_v0  ;;  %v99_v12 = vadd.f32 %v95_v4, %v476_v31  ;;  %288 = vtanh.f32 %v114_v61 }
  0x55   :  { %v150_v10 = vadd.f32 %v146_v63, %v124_v3  ;;  %v271_v13 = vpop.eup %270  ;;  %v121_v14 = vmul.f32 %v269_v9, %v489_v44  ;;  %290 = vtanh.f32 %v140_v1 }
  0x56   :  { %v273_v15 = vpop.eup %272  ;;  %v147_v17 = vmul.f32 %v271_v13, %v493_v48  ;;  %292 = vtanh.f32 %v166_v5 }
  0x57   :  { %v176_v16 = vadd.f32 %v172_v8, %v150_v10  ;;  %v275_v18 = vpop.eup %274  ;;  %v125_v19 = vadd.f32 %v121_v14, %v99_v12  ;;  %v173_v20 = vmul.f32 %v273_v15, %v499_v55  ;;  %294 = vtanh.f32 %v192_v7 }
  0x58   :  { %v277_v21 = vpop.eup %276  ;;  %v199_v25 = vmul.f32 %v275_v18, %v507_v0 }
  0x59   :  { %v202_v22 = vadd.f32 %v198_v11, %v176_v16  ;;  %v279_v23 = vpop.eup %278  ;;  %v151_v24 = vadd.f32 %v147_v17, %v125_v19  ;;  %v96_v26 = vmul.f32 %v277_v21, %v485_v41 }
  0x5a   :  { %v281_v27 = vpop.eup %280  ;;  %v122_v28 = vmul.f32 %v279_v23, %v489_v44 }
  0x5b   :  { %296 = vtanh.f32 %v202_v22  ;;  %v283_v29 = vpop.eup %282  ;;  %v177_v30 = vadd.f32 %v173_v20, %v151_v24  ;;  %v100_v32 = vadd.f32 %v96_v26, %v476_v31  ;;  %v148_v33 = vmul.f32 %v281_v27, %v493_v48 }
  0x5c   :  { %v285_v34 = vpop.eup %284  ;;  %v174_v38 = vmul.f32 %v283_v29, %v499_v55 }
  0x5d   :  { %v287_v35 = vpop.eup %286  ;;  %v203_v36 = vadd.f32 %v199_v25, %v177_v30  ;;  %v126_v37 = vadd.f32 %v122_v28, %v100_v32  ;;  %v200_v45 = vmul.f32 %v285_v34, %v507_v0 }
  0x5e   :  { %v289_v39 = vpop.eup %288  ;;  %v97_v40 = vmul.f32 %v287_v35, %v485_v41 }
  0x5f   :  { %v291_v42 = vpop.eup %290  ;;  %298 = vtanh.f32 %v203_v36  ;;  %v152_v43 = vadd.f32 %v148_v33, %v126_v37  ;;  %v123_v46 = vmul.f32 %v289_v39, %v489_v44 }
  0x60   :  { %v293_v47 = vpop.eup %292  ;;  %v101_v49 = vadd.f32 %v97_v40, %v476_v31  ;;  %v149_v50 = vmul.f32 %v291_v42, %v493_v48 }
  0x61   :  { %v295_v51 = vpop.eup %294  ;;  %v178_v52 = vadd.f32 %v174_v38, %v152_v43  ;;  %v175_v54 = vmul.f32 %v293_v47, %v499_v55 }
  0x62   :  { %v127_v53 = vadd.f32 %v123_v46, %v101_v49  ;;  %v201_v58 = vmul.f32 %v295_v51, %v507_v0 }
  0x63   :  { %v204_v56 = vadd.f32 %v200_v45, %v178_v52 }
  0x64   :  { %v153_v41 = vadd.f32 %v149_v50, %v127_v53 }
  0x65   :  { %v297_v57 = vpop.eup %296  ;;  %300 = vtanh.f32 %v204_v56 }
  0x66   :  { %v210_v59 = vmul.f32 0.5, %v297_v57  ;;  %v179_v60 = vadd.f32 %v175_v54, %v153_v41 }
  0x68   :  { %v214_v61 = vadd.f32 0.5, %v210_v59  ;;  %v205_v44 = vadd.f32 %v201_v58, %v179_v60 }
  0x69   :  { %v299_v62 = vpop.eup %298 }
  0x6a   :  { %218 = vst [vmem:[#allocation11] sm:$0xff] %v214_v61  ;;  %v211_v31 = vmul.f32 0.5, %v299_v62  ;;  %302 = vtanh.f32 %v205_v44 }
  0x6c   :  { %v215_v48 = vadd.f32 0.5, %v211_v31 }
  0x6e   :  { %219 = vst [vmem:[#allocation11 + $0x8] sm:$0xff] %v215_v48 }
  0x6f   :  { %v301_v63 = vpop.eup %300 }
  0x70   :  { %v212_v1 = vmul.f32 0.5, %v301_v63 }
  0x72   :  { %v216_v2 = vadd.f32 0.5, %v212_v1 }
  0x74   :  { %v303_v55 = vpop.eup %302  ;;  %220 = vst [vmem:[#allocation11 + $0x10] sm:$0xff] %v216_v2 }
  0x75   :  { %v213_v3 = vmul.f32 0.5, %v303_v55 }
  0x77   :  { %v217_v0 = vadd.f32 0.5, %v213_v3 }
  0x79   :  { %221 = vst [vmem:[#allocation11 + $0x18] sm:$0xff] %v217_v0 }
  0x7a   :  { %373 = shalt.err (!%p370_p13)
}
  0x7b   :  { %s374_s10 = scalar_lea.hbm %s549_s5, 512 }
  0x7c   :  { %p375_p0 = scmp.ne.s32.totalorder %s549_s5, %s374_s10  ;;  %p378_p1 = scmp.lt.u32.totalorder %s374_s10, %s549_s5 }
  0x7e   :  { %p380_p2 = pnand %p378_p1, %p375_p0 }
  0x80   :  { %383 = shalt.err (!%p380_p2)
}
  0x81   :  { %231 = dma.vmem_to_hbm [thread:$0]  %s229_s7, 512, %s549_s5, [#allocation5]  }
  0x82   :  { %390 = dma.done.wait [#allocation5], 512  }
  0x83   :  { %391 = vsyncadd [#allocation5], 4294966784 }
  0x84   :  { %235 = vsyncpa [#allocation4], 1 }
  0x85   :  { %236 = vsyncpa [#allocation5], 1 }
  0x86   :  { %237 = vsyncpa [#allocation6], 1 }
  0x87   :  { %238 = vsyncpa [#allocation9], 1 }

</bundles_post_ra>
